<compile_context>
chip_gen: v7x
topology: tpu7x:2x2x1
jax: 0.10.0
libtpu: 0.0.40
codegen_flags: <defaults>
</compile_context>

<pallas_src>
import jax
import jax.numpy as jnp
from jax import lax
from jax.experimental import pallas as pl
from jax.experimental.pallas import tpu as pltpu


# ----------------------------------------------------------------------------
# Helpers
# ----------------------------------------------------------------------------
def _round_up(x, m):
    return ((x + m - 1) // m) * m


def _pad_rows(x, target_rows, dtype):
    x = x.astype(dtype)
    pad = target_rows - x.shape[0]
    if pad == 0:
        return x
    return jnp.pad(x, ((0, pad),) + ((0, 0),) * (x.ndim - 1))


def _vmem_capacity_bytes():
    """Best-effort VMEM capacity query; conservative (v7x-sized) fallback."""
    try:
        return int(pltpu.get_tpu_info().vmem_capacity_bytes)
    except Exception:
        return 64 * 1024 * 1024


# ----------------------------------------------------------------------------
# Pallas kernels
# ----------------------------------------------------------------------------
def _train_score_bias_kernel(lhs_ref, rhs_ref, bh_ref, bt_ref, out_ref):
    """Per-triple score: out = sum(lhs*rhs, -1, keepdims) + bh + bt."""
    s = jnp.sum(lhs_ref[...] * rhs_ref[...], axis=-1, keepdims=True)
    out_ref[...] = s + bh_ref[...] + bt_ref[...]
    # TODO(synk): lane-dense (1, tile_b) output row would avoid masked vst,
    # but needs a (tile_b,1)->(1,tile_b) relayout; output bytes are negligible.


def _train_score_nobias_kernel(lhs_ref, rhs_ref, out_ref):
    out_ref[...] = jnp.sum(lhs_ref[...] * rhs_ref[...], axis=-1, keepdims=True)


def _make_eval_kernel(precision, with_bias):
    """Eval-mode kernel: score a query block against one entity tile.

    lhs: (tb, R), ent: (tile_n, R), bt: (1, tile_n) lane-dense, bh: (tb, 1),
    out: (tb, tile_n).  out = lhs @ ent.T (contraction over R, transposed-RHS
    MXU form) [+ bh + bt], f32 accumulate, cast to out dtype on store.
    """
    def _dot(lhs, ent):
        return lax.dot_general(
            lhs, ent,
            dimension_numbers=(((1,), (1,)), ((), ())),
            preferred_element_type=jnp.float32,
            precision=precision)

    if with_bias:
        def kernel(lhs_ref, ent_ref, bt_ref, bh_ref, out_ref):
            acc = _dot(lhs_ref[...], ent_ref[...]) + bh_ref[...] + bt_ref[...]
            out_ref[...] = acc.astype(out_ref.dtype)
    else:
        def kernel(lhs_ref, ent_ref, out_ref):
            out_ref[...] = _dot(lhs_ref[...], ent_ref[...]).astype(out_ref.dtype)
    return kernel


# ----------------------------------------------------------------------------
# Wrappers around pallas_call
# ----------------------------------------------------------------------------
def train_score(lhs_e, rhs_e, bh_b=None, bt_b=None, *, tile_b=512, with_bias=True):
    """eval_mode=False path: (B, 1) per-triple scores, tiled over B."""
    # TODO(synk): fuse the head/rel/tail gathers into this kernel (scalar-
    # prefetched index columns + manual row DMA) to avoid materializing the
    # (B, R) lhs/rhs intermediates in HBM on this memory-bound path.
    B, R = lhs_e.shape
    f32 = jnp.float32

    B8 = _round_up(B, 8)
    tile_b = min(tile_b, B8)
    # keep double-buffered (lhs + rhs) tiles within a conservative budget
    budget = 20 * 1024 * 1024
    while tile_b > 8 and 2 * (2 * tile_b * R * 4 + 3 * tile_b * 4) > budget:
        tile_b //= 2
    B_pad = _round_up(B8, tile_b)

    lhs_p = _pad_rows(lhs_e, B_pad, f32)
    rhs_p = _pad_rows(rhs_e, B_pad, f32)
    inputs = [lhs_p, rhs_p]
    in_specs = [pl.BlockSpec((tile_b, R), lambda i: (i, 0)),
                pl.BlockSpec((tile_b, R), lambda i: (i, 0))]
    if with_bias:
        inputs += [_pad_rows(bh_b, B_pad, f32), _pad_rows(bt_b, B_pad, f32)]
        in_specs += [pl.BlockSpec((tile_b, 1), lambda i: (i, 0)),
                     pl.BlockSpec((tile_b, 1), lambda i: (i, 0))]
    kernel = _train_score_bias_kernel if with_bias else _train_score_nobias_kernel

    out = pl.pallas_call(
        kernel,
        out_shape=jax.ShapeDtypeStruct((B_pad, 1), f32),
        grid_spec=pltpu.PrefetchScalarGridSpec(
            num_scalar_prefetch=0,
            grid=(B_pad // tile_b,),
            in_specs=in_specs,
            out_specs=pl.BlockSpec((tile_b, 1), lambda i: (i, 0)),
        ),
        compiler_params=pltpu.CompilerParams(
            dimension_semantics=("parallel",),
            vmem_limit_bytes=40 * 1024 * 1024,   # safe headroom on v7x's 64 MiB
        ),
    )(*inputs)
    return out[:B]


def eval_score(lhs_e, entity_w, bt_w=None, bh_b=None, *,
               tile_n=None, tile_b=None,
               stream_dtype=jnp.bfloat16, out_dtype=jnp.float32,
               precision=None, with_bias=True,
               max_resident_lhs_bytes=8 * 1024 * 1024):
    """eval_mode=True path: (B, N_ent) scores against the full entity table.

    Default layout: the (B, R) query block + head bias are VMEM-resident
    (constant index_map, DMA'd once); the grid is a single "parallel" axis
    over lane-dense entity tiles, so the entity table is streamed from HBM
    exactly once.  For very large B a 2-D (entity-tile, query-block) grid
    with tile_b=256 is used instead.
    """
    B, R = lhs_e.shape
    N = entity_w.shape[0]
    f32 = jnp.float32
    stream_dtype = jnp.dtype(stream_dtype)
    out_dtype = jnp.dtype(out_dtype)
    esz = stream_dtype.itemsize
    osz = out_dtype.itemsize

    if precision is None:
        # bf16 stream: native single-pass MXU; f32 stream: HIGH (bf16x3),
        # not HIGHEST (3-6 passes), per review.
        precision = (lax.Precision.HIGH if stream_dtype == jnp.float32
                     else lax.Precision.DEFAULT)

    # --- generation-aware budgets ---
    vmem_cap = _vmem_capacity_bytes()
    big_vmem = vmem_cap >= 96 * 1024 * 1024          # v5e / v6e (128 MiB VMEM)
    budget = (48 if big_vmem else 24) * 1024 * 1024
    vmem_cap_limit = (96 if big_vmem else 48) * 1024 * 1024
    if tile_n is None:
        tile_n = 2048 if big_vmem else 1024

    # --- batch (query) handling: resident if small, otherwise tiled ---
    B8 = _round_up(B, 8)
    lhs_bytes = B8 * R * esz + B8 * 4
    lhs_resident = (lhs_bytes <= max_resident_lhs_bytes) and (B8 <= 4096)
    if lhs_resident:
        B_pad = B8
        eff_tile_b = B_pad
    else:
        if tile_b is None:
            tile_b = 256            # match 256-wide MXU on v6e/v7x
        tile_b = min(tile_b, B8)
        B_pad = _round_up(B8, tile_b)
        eff_tile_b = tile_b

    # --- entity tiling (lane-dense, auto-shrunk to the VMEM budget) ---
    tile_n = min(_round_up(tile_n, 128), _round_up(N, 128))

    def footprint(tn):
        return 2 * (tn * R * esz           # entity tile (double-buffered)
                    + eff_tile_b * R * esz  # lhs block
                    + eff_tile_b * tn * osz  # output tile
                    + tn * 4                # bt row tile
                    + eff_tile_b * 4)       # bh column

    while tile_n > 128 and footprint(tile_n) > budget:
        tile_n = _round_up(tile_n // 2, 128)
    tile_n = max(tile_n, 128)
    N_pad = _round_up(N, tile_n)
    vmem_limit = int(min(max(footprint(tile_n) + (16 << 20), 32 << 20),
                         vmem_cap_limit))
    # TODO(synk): for very large rank (R >= 1024) add a K-axis grid dimension
    # with an f32 VMEM accumulator instead of holding full-R tiles.
    # TODO(synk): optional fp8 entity streaming (+ per-row scales) on v7x.

    lhs_p = _pad_rows(lhs_e, B_pad, stream_dtype)
    ent_p = _pad_rows(entity_w, N_pad, stream_dtype)
    inputs = [lhs_p, ent_p]

    if lhs_resident:
        grid = (N_pad // tile_n,)
        in_specs = [
            pl.BlockSpec((B_pad, R), lambda jn: (0, 0)),     # lhs: DMA'd once, resident
            pl.BlockSpec((tile_n, R), lambda jn: (jn, 0)),   # entity: streamed once
        ]
        out_specs = pl.BlockSpec((B_pad, tile_n), lambda jn: (0, jn))
        dim_sem = ("parallel",)
        if with_bias:
            bt_row = jnp.pad(bt_w.reshape(1, N).astype(f32), ((0, 0), (0, N_pad - N)))
            bh_p = _pad_rows(bh_b, B_pad, f32)
            inputs += [bt_row, bh_p]
            in_specs += [
                pl.BlockSpec((1, tile_n), lambda jn: (0, jn)),   # bt row tile
                pl.BlockSpec((B_pad, 1), lambda jn: (0, 0)),     # bh column, resident
            ]
    else:
        grid = (N_pad // tile_n, B_pad // tile_b)
        in_specs = [
            pl.BlockSpec((tile_b, R), lambda jn, jb: (jb, 0)),   # lhs block
            pl.BlockSpec((tile_n, R), lambda jn, jb: (jn, 0)),   # entity (resident over jb)
        ]
        out_specs = pl.BlockSpec((tile_b, tile_n), lambda jn, jb: (jb, jn))
        dim_sem = ("parallel", "parallel")
        if with_bias:
            bt_row = jnp.pad(bt_w.reshape(1, N).astype(f32), ((0, 0), (0, N_pad - N)))
            bh_p = _pad_rows(bh_b, B_pad, f32)
            inputs += [bt_row, bh_p]
            in_specs += [
                pl.BlockSpec((1, tile_n), lambda jn, jb: (0, jn)),
                pl.BlockSpec((tile_b, 1), lambda jn, jb: (jb, 0)),
            ]

    out = pl.pallas_call(
        _make_eval_kernel(precision, with_bias),
        out_shape=jax.ShapeDtypeStruct((B_pad, N_pad), out_dtype),
        grid_spec=pltpu.PrefetchScalarGridSpec(
            num_scalar_prefetch=0,
            grid=grid,
            in_specs=in_specs,
            out_specs=out_specs,
        ),
        compiler_params=pltpu.CompilerParams(
            dimension_semantics=dim_sem,
            vmem_limit_bytes=vmem_limit,
        ),
    )(*inputs)
    return out[:B, :N]


# ----------------------------------------------------------------------------
# KGModel in JAX (parameter container + forward glue)
# ----------------------------------------------------------------------------
class KGModelPallas:
    def __init__(self, sizes, rank, dropout, gamma, data_type, bias, init_size,
                 key=jax.random.PRNGKey(0),
                 stream_dtype=jnp.bfloat16, out_dtype=jnp.float32):
        # TODO(synk): data_type='double' (float64) not supported on TPU MXU;
        # kernels run in float32 weights; eval streams bf16 by default
        # (set stream_dtype=jnp.float32 for exact-f32 scoring).
        self.sizes = sizes
        self.rank = rank
        self.dropout = dropout          # inference path: dropout is identity
        self.bias = bias
        self.init_size = init_size
        self.stream_dtype = stream_dtype
        self.out_dtype = out_dtype
        self.gamma = jnp.asarray([gamma], dtype=jnp.float32)

        k_ent, k_rel = jax.random.split(key)
        self.entity = init_size * jax.random.normal(
            k_ent, (sizes[0], rank), dtype=jnp.float32)
        self.rel = init_size * jax.random.normal(
            k_rel, (sizes[1], rank), dtype=jnp.float32)
        # bh / bt explicitly zero-initialised, as in the PyTorch module.
        self.bh = jnp.zeros((sizes[0], 1), dtype=jnp.float32)
        self.bt = jnp.zeros((sizes[0], 1), dtype=jnp.float32)

    # --- concrete versions of the abstract methods (DistMult-style) ---
    def get_queries(self, queries):
        head_e = jnp.take(self.entity, queries[:, 0], axis=0)
        rel_e = jnp.take(self.rel, queries[:, 1], axis=0)
        lhs_e = head_e * rel_e                       # hoisted out of the kernel
        bh_b = jnp.take(self.bh, queries[:, 0], axis=0)
        return lhs_e, bh_b

    def get_queries_lp(self, queries, r):
        head_e = jnp.take(self.entity, queries[:, 0], axis=0)
        rel_e = jnp.take(self.rel, r, axis=0)
        lhs_e = head_e * rel_e
        bh_b = jnp.take(self.bh, queries[:, 0], axis=0)
        return lhs_e, bh_b

    def get_rhs(self, queries, eval_mode):
        if eval_mode:
            return self.entity, self.bt
        rhs_e = jnp.take(self.entity, queries[:, 2], axis=0)
        bt_b = jnp.take(self.bt, queries[:, 2], axis=0)
        return rhs_e, bt_b

    def get_factors(self, queries):
        head_e = jnp.take(self.entity, queries[:, 0], axis=0)
        rel_e = jnp.take(self.rel, queries[:, 1], axis=0)
        rhs_e = jnp.take(self.entity, queries[:, 2], axis=0)
        return head_e, rel_e, rhs_e

    def score(self, lhs, rhs, eval_mode):
        lhs_e, lhs_biases = lhs
        rhs_e, rhs_biases = rhs
        if self.bias == 'learn':
            if eval_mode:
                return eval_score(lhs_e, rhs_e, rhs_biases, lhs_biases,
                                  stream_dtype=self.stream_dtype,
                                  out_dtype=self.out_dtype)
            return train_score(lhs_e, rhs_e, lhs_biases, rhs_biases)
        # bias == 'constant' / 'none': bias-free kernel variants (no zero DMAs)
        if eval_mode:
            base = eval_score(lhs_e, rhs_e, with_bias=False,
                              stream_dtype=self.stream_dtype,
                              out_dtype=self.out_dtype)
        else:
            base = train_score(lhs_e, rhs_e, with_bias=False)
        if self.bias == 'constant':
            return self.gamma[0] + base
        return base

    def forward(self, queries, eval_mode=False):
        lhs = self.get_queries(queries)
        rhs = self.get_rhs(queries, eval_mode)
        predictions = self.score(lhs, rhs, eval_mode)
        factors = self.get_factors(queries)
        return predictions, factors


# ----------------------------------------------------------------------------
# Self-test
# ----------------------------------------------------------------------------
if __name__ == "__main__":
    N_ENT, N_REL, RANK, BATCH = 256, 8, 128, 8
    sizes = (N_ENT, N_REL, N_ENT)
    HI = jax.lax.Precision.HIGHEST

    # exact-f32 model for bit-level checks
    model = KGModelPallas(sizes, RANK, dropout=0.0, gamma=2.0,
                          data_type='float', bias='learn', init_size=1e-1,
                          key=jax.random.PRNGKey(0),
                          stream_dtype=jnp.float32)

    kq = jax.random.PRNGKey(1)
    kh, kr, kt = jax.random.split(kq, 3)
    queries = jnp.stack([
        jax.random.randint(kh, (BATCH,), 0, N_ENT),
        jax.random.randint(kr, (BATCH,), 0, N_REL),
        jax.random.randint(kt, (BATCH,), 0, N_ENT),
    ], axis=1).astype(jnp.int32)

    # eval_mode=False: (B, 1) predictions; eval_mode=True: (B, N_ent)
    preds_train, factors = model.forward(queries, eval_mode=False)
    preds_eval, _ = model.forward(queries, eval_mode=True)
    jax.block_until_ready((preds_train, preds_eval, factors))

    # --- pure-JAX reference checks (f32) ---
    head_e = model.entity[queries[:, 0]]
    rel_e = model.rel[queries[:, 1]]
    rhs_e = model.entity[queries[:, 2]]
    bh_b = model.bh[queries[:, 0]]
    bt_b = model.bt[queries[:, 2]]
    lhs_e = head_e * rel_e
    ref_train = jnp.sum(lhs_e * rhs_e, axis=-1, keepdims=True) + bh_b + bt_b
    ref_eval = (jnp.matmul(lhs_e, model.entity.T, precision=HI)
                + bh_b + model.bt.T)

    assert preds_train.shape == (BATCH, 1)
    assert preds_eval.shape == (BATCH, N_ENT)
    assert jnp.allclose(preds_train, ref_train, atol=1e-5, rtol=1e-5)
    assert jnp.allclose(preds_eval, ref_eval, atol=1e-5, rtol=1e-4)

    # --- non-multiple entity count exercises padding + slicing ---
    N_ODD = 200
    out_odd = eval_score(lhs_e, model.entity[:N_ODD], model.bt[:N_ODD], bh_b,
                         stream_dtype=jnp.float32)
    ref_odd = (jnp.matmul(lhs_e, model.entity[:N_ODD].T, precision=HI)
               + bh_b + model.bt[:N_ODD].T)
    assert out_odd.shape == (BATCH, N_ODD)
    assert jnp.allclose(out_odd, ref_odd, atol=1e-5, rtol=1e-4)

    # --- fallback 2-D grid (non-resident lhs) path ---
    out_2d = eval_score(lhs_e, model.entity, model.bt, bh_b,
                        stream_dtype=jnp.float32, max_resident_lhs_bytes=0)
    assert jnp.allclose(out_2d, ref_eval, atol=1e-5, rtol=1e-4)

    # --- default model: bf16-streamed table/lhs, f32 accumulate + f32 output ---
    model_bf16 = KGModelPallas(sizes, RANK, dropout=0.0, gamma=2.0,
                               data_type='float', bias='learn', init_size=1e-1,
                               key=jax.random.PRNGKey(0))
    pe_bf16, _ = model_bf16.forward(queries, eval_mode=True)
    jax.block_until_ready(pe_bf16)
    lhs_q = lhs_e.astype(jnp.bfloat16).astype(jnp.float32)
    ent_q = model.entity.astype(jnp.bfloat16).astype(jnp.float32)
    ref_bf16 = jnp.matmul(lhs_q, ent_q.T, precision=HI) + bh_b + model.bt.T
    assert jnp.allclose(pe_bf16, ref_bf16, atol=1e-4, rtol=1e-3)

    # --- bf16 output flag (halves the (B, N_ent) writeback) ---
    out_bf16o = eval_score(lhs_e, model.entity, model.bt, bh_b,
                           stream_dtype=jnp.bfloat16, out_dtype=jnp.bfloat16)
    assert out_bf16o.dtype == jnp.bfloat16
    assert jnp.allclose(out_bf16o.astype(jnp.float32), ref_bf16,
                        atol=1e-3, rtol=1e-2)

    # --- bias='constant' path uses the bias-free kernels ---
    model_c = KGModelPallas(sizes, RANK, dropout=0.0, gamma=2.0,
                            data_type='float', bias='constant', init_size=1e-1,
                            key=jax.random.PRNGKey(0),
                            stream_dtype=jnp.float32)
    pc_train, _ = model_c.forward(queries, eval_mode=False)
    pc_eval, _ = model_c.forward(queries, eval_mode=True)
    jax.block_until_ready((pc_train, pc_eval))
    assert jnp.allclose(pc_train, 2.0 + (ref_train - bh_b - bt_b),
                        atol=1e-5, rtol=1e-5)
    assert jnp.allclose(pc_eval, 2.0 + (ref_eval - bh_b - model.bt.T),
                        atol=1e-5, rtol=1e-4)

    print("KERNEL_OK")
</pallas_src>

<mosaic_0001>
module attributes {stable_mosaic.version = 11 : i64} {
  func.func @_train_score_bias_kernel(%arg0: i32, %arg1: memref<8x128xf32, #tpu.memory_space<vmem>>, %arg2: memref<8x128xf32, #tpu.memory_space<vmem>>, %arg3: memref<8x1xf32, #tpu.memory_space<vmem>>, %arg4: memref<8x1xf32, #tpu.memory_space<vmem>>, %arg5: memref<8x1xf32, #tpu.memory_space<vmem>>) attributes {dimension_semantics = [#tpu.dimension_semantics<parallel>], iteration_bounds = array<i64: 1>, scalar_prefetch = 0 : i64, scratch_operands = 0 : i64, tpu.core_type = #tpu.core_type<tc>, window_params = [{transform_indices = @transform_0, window_bounds = array<i64: 8, 128>}, {transform_indices = @transform_1, window_bounds = array<i64: 8, 128>}, {transform_indices = @transform_2, window_bounds = array<i64: 8, 1>}, {transform_indices = @transform_3, window_bounds = array<i64: 8, 1>}, {transform_indices = @transform_4, window_bounds = array<i64: 8, 1>}]} {
    %c0 = arith.constant 0 : index
    %c0_0 = arith.constant 0 : index
    %0 = vector.load %arg1[%c0, %c0_0] : memref<8x128xf32, #tpu.memory_space<vmem>>, vector<8x128xf32>
    %c0_1 = arith.constant 0 : index
    %c0_2 = arith.constant 0 : index
    %1 = vector.load %arg2[%c0_1, %c0_2] : memref<8x128xf32, #tpu.memory_space<vmem>>, vector<8x128xf32>
    %2 = arith.mulf %0, %1 : vector<8x128xf32>
    %cst = arith.constant dense<0.000000e+00> : vector<8xf32>
    %3 = vector.multi_reduction <add>, %2, %cst [1] : vector<8x128xf32> to vector<8xf32>
    %4 = vector.shape_cast %3 : vector<8xf32> to vector<8x1xf32>
    %c0_3 = arith.constant 0 : index
    %c0_4 = arith.constant 0 : index
    %5 = vector.load %arg3[%c0_3, %c0_4] : memref<8x1xf32, #tpu.memory_space<vmem>>, vector<8x1xf32>
    %6 = arith.addf %4, %5 : vector<8x1xf32>
    %c0_5 = arith.constant 0 : index
    %c0_6 = arith.constant 0 : index
    %7 = vector.load %arg4[%c0_5, %c0_6] : memref<8x1xf32, #tpu.memory_space<vmem>>, vector<8x1xf32>
    %8 = arith.addf %6, %7 : vector<8x1xf32>
    %c0_7 = arith.constant 0 : index
    %c0_8 = arith.constant 0 : index
    %9 = vector.load %arg5[%c0_7, %c0_8] : memref<8x1xf32, #tpu.memory_space<vmem>>, vector<8x1xf32>
    tpu.vector_store %arg5[%c0_7, %c0_8], %8 {strides = array<i32>} : memref<8x1xf32, #tpu.memory_space<vmem>>, vector<8x1xf32>,
    return
  }
  func.func @transform_0(%arg0: i32) -> (i32, i32) {
    %c0_i32 = arith.constant 0 : i32
    %c0_i32_0 = arith.constant 0 : i32
    return %arg0, %c0_i32 : i32, i32
  }
  func.func @transform_1(%arg0: i32) -> (i32, i32) {
    %c0_i32 = arith.constant 0 : i32
    %c0_i32_0 = arith.constant 0 : i32
    return %arg0, %c0_i32 : i32, i32
  }
  func.func @transform_2(%arg0: i32) -> (i32, i32) {
    %c0_i32 = arith.constant 0 : i32
    %c0_i32_0 = arith.constant 0 : i32
    return %arg0, %c0_i32 : i32, i32
  }
  func.func @transform_3(%arg0: i32) -> (i32, i32) {
    %c0_i32 = arith.constant 0 : i32
    %c0_i32_0 = arith.constant 0 : i32
    return %arg0, %c0_i32 : i32, i32
  }
  func.func @transform_4(%arg0: i32) -> (i32, i32) {
    %c0_i32 = arith.constant 0 : i32
    %c0_i32_0 = arith.constant 0 : i32
    return %arg0, %c0_i32 : i32, i32
  }
}

</mosaic_0001>

<bundles_post_ra>
// kernel: tpu_custom_call.1
= control target key start
LH: loop header
LB: loop body
LE: loop exit
PB: predicated region body
PF: predicated region fallthrough
CT: control target
= control target key end

     0   :  { %vm26_vm0 = vcmask 7168   ;;  %s72_s0 = inlined_call_operand.vmem [shape: f32[8,128], index: 0, kind: input, shape index: {}]   ;;  %s73_s1 = inlined_call_operand.vmem [shape: f32[8,128], index: 1, kind: input, shape index: {}]   ;;  %s74_s2 = inlined_call_operand.vmem [shape: f32[8,1], index: 2, kind: input, shape index: {}]   ;;  %s75_s3 = inlined_call_operand.vmem [shape: f32[8,1], index: 3, kind: input, shape index: {}]   ;;  %s76_s4 = inlined_call_operand.vmem [shape: f32[8,1], index: 4, kind: output, shape index: {}]  }
   0x1   :  { %v17_v0 = vld [vmem:[%s72_s0] sm:$0xff] }
   0x2   :  { %v18_v1 = vld [vmem:[%s73_s1] sm:$0xff] }
   0x3   :  { %v19_v2 = vmul.f32 %v18_v1, %v17_v0  ;;  %v22_v3 = vld [vmem:[%s74_s2] sm:$0xff] }
   0x4   :  { %v24_v5 = vld [vmem:[%s75_s3] sm:$0xff] }
   0x5   :  { %20 = vadd.xlane.f32.xlu0 %v19_v2 }
  0x92   :  { %v21_v4 = vpop.xlane.xlu0 %20 }
  0x93   :  { %v23_v6 = vadd.f32 %v22_v3, %v21_v4 }
  0x95   :  { %v25_v7 = vadd.f32 %v24_v5, %v23_v6 }
  0x97   :  { %27 = vst.msk [vmem:[%s76_s4] sm:$0xff] %vm26_vm0, %v25_v7 }

</bundles_post_ra>
